<compile_context>
chip_gen: v5e
topology: v5e:2x2
jax: 0.10.0
libtpu: 0.0.40
codegen_flags: <defaults>
</compile_context>

<pallas_src>
import functools
import math

import jax
import jax.numpy as jnp
from jax.experimental import pallas as pl
from jax.experimental.pallas import tpu as pltpu


def _attn_kernel(q_ref, k_ref, v_ref, mask_ref, o_ref, *, batch, seq):
    """q_ref/k_ref/v_ref/o_ref: (B*S, D) slabs; mask_ref: (S, S)."""
    m = mask_ref[...].astype(jnp.float32)            # read the shared mask once
    scale = 1.0 / math.sqrt(q_ref.shape[-1])

    # Sequential per-batch slices (B is tiny and static): bounds the live vreg
    # working set to a single batch's intermediates at a time.
    for b in range(batch):
        lo = b * seq                                  # static offset
        q = q_ref[pl.ds(lo, seq), :]
        k = k_ref[pl.ds(lo, seq), :]
        v = v_ref[pl.ds(lo, seq), :]

        # Fold 1/sqrt(d) into q; bf16 MXU operands with f32 accumulation.
        q_s = (q.astype(jnp.float32) * scale).astype(jnp.bfloat16)
        s = jnp.einsum("qd,kd->qk", q_s, k.astype(jnp.bfloat16),
                       preferred_element_type=jnp.float32)
        s = s + m

        # Numerically-stable softmax in f32.
        s_max = jnp.max(s, axis=-1, keepdims=True)
        p = jnp.exp(s - s_max)
        denom = jnp.sum(p, axis=-1, keepdims=True)

        out = jnp.einsum("qk,kd->qd", p.astype(jnp.bfloat16),
                         v.astype(jnp.bfloat16),
                         preferred_element_type=jnp.float32)
        # Exact reciprocal of the tiny (S, 1) column is essentially free and
        # tighter than approx=True.
        out = out * pl.reciprocal(denom, approx=False)

        o_ref[pl.ds(lo, seq), :] = out.astype(o_ref.dtype)


def sdpa(q, k2, v2, mask):
    B, S, D = q.shape
    assert k2.shape == (B, S, D) and v2.shape == (B, S, D)
    assert mask.shape[-2:] == (S, S)

    # Contiguous 2-D slabs at the pallas_call boundary (free reshapes).
    q2d = q.reshape(B * S, D)
    k2d = k2.reshape(B * S, D)
    v2d = v2.reshape(B * S, D)
    m2d = mask.reshape(S, S)          # broadcast mask, shared across batches

    kernel = functools.partial(_attn_kernel, batch=B, seq=S)

    itemsize = jnp.dtype(q.dtype).itemsize
    cost = pl.CostEstimate(
        flops=4 * B * S * S * D,                           # QK^T + PV matmuls
        transcendentals=B * S * S,                         # softmax exp
        bytes_accessed=(4 * B * S * D * itemsize           # q, k, v, out
                        + S * S * jnp.dtype(mask.dtype).itemsize),
    )

    out2d = pl.pallas_call(
        kernel,
        out_shape=jax.ShapeDtypeStruct((B * S, D), q.dtype),
        grid_spec=pltpu.PrefetchScalarGridSpec(
            num_scalar_prefetch=0,
            grid=(1,),
            in_specs=[
                pl.BlockSpec((B * S, D), lambda i: (0, 0)),   # q
                pl.BlockSpec((B * S, D), lambda i: (0, 0)),   # k2
                pl.BlockSpec((B * S, D), lambda i: (0, 0)),   # v2
                pl.BlockSpec((S, S), lambda i: (0, 0)),       # mask
            ],
            out_specs=pl.BlockSpec((B * S, D), lambda i: (0, 0)),
        ),
        compiler_params=pltpu.CompilerParams(
            dimension_semantics=("arbitrary",)),
        cost_estimate=cost,
    )(q2d, k2d, v2d, m2d)

    return out2d.reshape(B, S, D)


def model_forward(k2, v2, q, mask):
    """Matches the PyTorch Model.forward(k2, v2, q, mask) signature."""
    return sdpa(q, k2, v2, mask)


def sdpa_ref(q, k2, v2, mask):
    d = q.shape[-1]
    s = jnp.einsum("bqd,bkd->bqk", q, k2) / math.sqrt(d) + mask
    attn = jax.nn.softmax(s, axis=-1)
    return jnp.einsum("bqk,bkd->bqd", attn, v2)


if __name__ == "__main__":
    B, S, D = 2, 56, 32   # seq matches the module's (1, 56, 56) mask

    key = jax.random.PRNGKey(0)
    kq, kk, kv, km = jax.random.split(key, 4)

    q = jax.random.normal(kq, (B, S, D), dtype=jnp.float32)
    k2 = jax.random.normal(kk, (B, S, D), dtype=jnp.float32)
    v2 = jax.random.normal(kv, (B, S, D), dtype=jnp.float32)
    # additive attention mask: -1e9 where "masked", 0 elsewhere
    mask = jnp.where(jax.random.uniform(km, (1, S, S)) > 0.7,
                     jnp.float32(-1000000000.0), jnp.float32(0.0))

    out = model_forward(k2, v2, q, mask)
    out = jax.block_until_ready(out)

    ref = sdpa_ref(q, k2, v2, mask)
    assert out.shape == (B, S, D)
    # bf16 MXU operands => looser tolerance than pure f32.
    assert jnp.allclose(out, ref, atol=5e-2, rtol=5e-2)

    print("KERNEL_OK")
</pallas_src>

<mosaic_0001>
module attributes {stable_mosaic.version = 11 : i64} {
  func.func @_attn_kernel(%arg0: i32, %arg1: memref<112x32xf32, #tpu.memory_space<vmem>>, %arg2: memref<112x32xf32, #tpu.memory_space<vmem>>, %arg3: memref<112x32xf32, #tpu.memory_space<vmem>>, %arg4: memref<56x56xf32, #tpu.memory_space<vmem>>, %arg5: memref<112x32xf32, #tpu.memory_space<vmem>>) attributes {dimension_semantics = [#tpu.dimension_semantics<arbitrary>], iteration_bounds = array<i64: 1>, scalar_prefetch = 0 : i64, scratch_operands = 0 : i64, tpu.core_type = #tpu.core_type<tc>, window_params = [{pipeline_mode = #tpu.pipeline_mode<synchronous>, transform_indices = @transform_0, window_bounds = array<i64: 112, 32>}, {pipeline_mode = #tpu.pipeline_mode<synchronous>, transform_indices = @transform_1, window_bounds = array<i64: 112, 32>}, {pipeline_mode = #tpu.pipeline_mode<synchronous>, transform_indices = @transform_2, window_bounds = array<i64: 112, 32>}, {pipeline_mode = #tpu.pipeline_mode<synchronous>, transform_indices = @transform_3, window_bounds = array<i64: 56, 56>}, {pipeline_mode = #tpu.pipeline_mode<synchronous>, transform_indices = @transform_4, window_bounds = array<i64: 112, 32>}]} {
    %c0 = arith.constant 0 : index
    %c0_0 = arith.constant 0 : index
    %0 = vector.load %arg4[%c0, %c0_0] : memref<56x56xf32, #tpu.memory_space<vmem>>, vector<56x56xf32>
    %c0_1 = arith.constant 0 : index
    %c0_2 = arith.constant 0 : index
    %1 = vector.load %arg1[%c0_1, %c0_2] : memref<112x32xf32, #tpu.memory_space<vmem>>, vector<56x32xf32>
    %c0_3 = arith.constant 0 : index
    %c0_4 = arith.constant 0 : index
    %2 = vector.load %arg2[%c0_3, %c0_4] : memref<112x32xf32, #tpu.memory_space<vmem>>, vector<56x32xf32>
    %c0_5 = arith.constant 0 : index
    %c0_6 = arith.constant 0 : index
    %3 = vector.load %arg3[%c0_5, %c0_6] : memref<112x32xf32, #tpu.memory_space<vmem>>, vector<56x32xf32>
    %cst = arith.constant 0.176776692 : f32
    %4 = vector.broadcast %cst : f32 to vector<56x32xf32>
    %5 = arith.mulf %1, %4 : vector<56x32xf32>
    %6 = arith.truncf %5 : vector<56x32xf32> to vector<56x32xbf16>
    %7 = arith.truncf %2 : vector<56x32xf32> to vector<56x32xbf16>
    "tpu.trace_start"() <{level = 10 : i32, message = "qd,kd->qk"}> : () -> ()
    %cst_7 = arith.constant dense<0.000000e+00> : vector<56x56xf32>
    %8 = tpu.matmul %6, %7, %cst_7 {dimension_numbers = #tpu.dot_dimension_numbers<[1], [1], [0], [0], [0, 0, 1, 0], [], []>} : vector<56x32xbf16>, vector<56x32xbf16>, vector<56x56xf32> -> vector<56x56xf32>
    "tpu.trace_stop"() : () -> ()
    %9 = arith.addf %8, %0 : vector<56x56xf32>
    %cst_8 = arith.constant dense<0xFF800000> : vector<56xf32>
    %10 = vector.multi_reduction <maximumf>, %9, %cst_8 [1] : vector<56x56xf32> to vector<56xf32>
    %11 = vector.shape_cast %10 : vector<56xf32> to vector<56x1xf32>
    %12 = vector.broadcast %11 : vector<56x1xf32> to vector<56x56xf32>
    %13 = arith.subf %9, %12 : vector<56x56xf32>
    %14 = math.exp %13 : vector<56x56xf32>
    %cst_9 = arith.constant dense<0.000000e+00> : vector<56xf32>
    %15 = vector.multi_reduction <add>, %14, %cst_9 [1] : vector<56x56xf32> to vector<56xf32>
    %16 = vector.shape_cast %15 : vector<56xf32> to vector<56x1xf32>
    %17 = arith.truncf %14 : vector<56x56xf32> to vector<56x56xbf16>
    %18 = arith.truncf %3 : vector<56x32xf32> to vector<56x32xbf16>
    "tpu.trace_start"() <{level = 10 : i32, message = "qk,kd->qd"}> : () -> ()
    %cst_10 = arith.constant dense<0.000000e+00> : vector<56x32xf32>
    %19 = tpu.matmul %17, %18, %cst_10 {dimension_numbers = #tpu.dot_dimension_numbers<[1], [0], [0], [1], [0, 0, 1, 1], [], []>} : vector<56x56xbf16>, vector<56x32xbf16>, vector<56x32xf32> -> vector<56x32xf32>
    "tpu.trace_stop"() : () -> ()
    %20 = tpu.reciprocal %16 : vector<56x1xf32> -> vector<56x1xf32>
    %21 = vector.broadcast %20 : vector<56x1xf32> to vector<56x32xf32>
    %22 = arith.mulf %19, %21 : vector<56x32xf32>
    %c0_11 = arith.constant 0 : index
    %c0_12 = arith.constant 0 : index
    %23 = vector.load %arg5[%c0_11, %c0_12] : memref<112x32xf32, #tpu.memory_space<vmem>>, vector<56x32xf32>
    tpu.vector_store %arg5[%c0_11, %c0_12], %22 {strides = array<i32>} : memref<112x32xf32, #tpu.memory_space<vmem>>, vector<56x32xf32>,
    %c56 = arith.constant 56 : index
    %c0_13 = arith.constant 0 : index
    %24 = vector.load %arg1[%c56, %c0_13] : memref<112x32xf32, #tpu.memory_space<vmem>>, vector<56x32xf32>
    %c56_14 = arith.constant 56 : index
    %c0_15 = arith.constant 0 : index
    %25 = vector.load %arg2[%c56_14, %c0_15] : memref<112x32xf32, #tpu.memory_space<vmem>>, vector<56x32xf32>
    %c56_16 = arith.constant 56 : index
    %c0_17 = arith.constant 0 : index
    %26 = vector.load %arg3[%c56_16, %c0_17] : memref<112x32xf32, #tpu.memory_space<vmem>>, vector<56x32xf32>
    %cst_18 = arith.constant 0.176776692 : f32
    %27 = vector.broadcast %cst_18 : f32 to vector<56x32xf32>
    %28 = arith.mulf %24, %27 : vector<56x32xf32>
    %29 = arith.truncf %28 : vector<56x32xf32> to vector<56x32xbf16>
    %30 = arith.truncf %25 : vector<56x32xf32> to vector<56x32xbf16>
    "tpu.trace_start"() <{level = 10 : i32, message = "qd,kd->qk"}> : () -> ()
    %cst_19 = arith.constant dense<0.000000e+00> : vector<56x56xf32>
    %31 = tpu.matmul %29, %30, %cst_19 {dimension_numbers = #tpu.dot_dimension_numbers<[1], [1], [0], [0], [0, 0, 1, 0], [], []>} : vector<56x32xbf16>, vector<56x32xbf16>, vector<56x56xf32> -> vector<56x56xf32>
    "tpu.trace_stop"() : () -> ()
    %32 = arith.addf %31, %0 : vector<56x56xf32>
    %cst_20 = arith.constant dense<0xFF800000> : vector<56xf32>
    %33 = vector.multi_reduction <maximumf>, %32, %cst_20 [1] : vector<56x56xf32> to vector<56xf32>
    %34 = vector.shape_cast %33 : vector<56xf32> to vector<56x1xf32>
    %35 = vector.broadcast %34 : vector<56x1xf32> to vector<56x56xf32>
    %36 = arith.subf %32, %35 : vector<56x56xf32>
    %37 = math.exp %36 : vector<56x56xf32>
    %cst_21 = arith.constant dense<0.000000e+00> : vector<56xf32>
    %38 = vector.multi_reduction <add>, %37, %cst_21 [1] : vector<56x56xf32> to vector<56xf32>
    %39 = vector.shape_cast %38 : vector<56xf32> to vector<56x1xf32>
    %40 = arith.truncf %37 : vector<56x56xf32> to vector<56x56xbf16>
    %41 = arith.truncf %26 : vector<56x32xf32> to vector<56x32xbf16>
    "tpu.trace_start"() <{level = 10 : i32, message = "qk,kd->qd"}> : () -> ()
    %cst_22 = arith.constant dense<0.000000e+00> : vector<56x32xf32>
    %42 = tpu.matmul %40, %41, %cst_22 {dimension_numbers = #tpu.dot_dimension_numbers<[1], [0], [0], [1], [0, 0, 1, 1], [], []>} : vector<56x56xbf16>, vector<56x32xbf16>, vector<56x32xf32> -> vector<56x32xf32>
    "tpu.trace_stop"() : () -> ()
    %43 = tpu.reciprocal %39 : vector<56x1xf32> -> vector<56x1xf32>
    %44 = vector.broadcast %43 : vector<56x1xf32> to vector<56x32xf32>
    %45 = arith.mulf %42, %44 : vector<56x32xf32>
    %c56_23 = arith.constant 56 : index
    %c0_24 = arith.constant 0 : index
    %46 = vector.load %arg5[%c56_23, %c0_24] : memref<112x32xf32, #tpu.memory_space<vmem>>, vector<56x32xf32>
    tpu.vector_store %arg5[%c56_23, %c0_24], %45 {strides = array<i32>} : memref<112x32xf32, #tpu.memory_space<vmem>>, vector<56x32xf32>,
    return
  }
  func.func @transform_0(%arg0: i32) -> (i32, i32) {
    %c0_i32 = arith.constant 0 : i32
    %c0_i32_0 = arith.constant 0 : i32
    %c0_i32_1 = arith.constant 0 : i32
    return %c0_i32, %c0_i32_0 : i32, i32
  }
  func.func @transform_1(%arg0: i32) -> (i32, i32) {
    %c0_i32 = arith.constant 0 : i32
    %c0_i32_0 = arith.constant 0 : i32
    %c0_i32_1 = arith.constant 0 : i32
    return %c0_i32, %c0_i32_0 : i32, i32
  }
  func.func @transform_2(%arg0: i32) -> (i32, i32) {
    %c0_i32 = arith.constant 0 : i32
    %c0_i32_0 = arith.constant 0 : i32
    %c0_i32_1 = arith.constant 0 : i32
    return %c0_i32, %c0_i32_0 : i32, i32
  }
  func.func @transform_3(%arg0: i32) -> (i32, i32) {
    %c0_i32 = arith.constant 0 : i32
    %c0_i32_0 = arith.constant 0 : i32
    %c0_i32_1 = arith.constant 0 : i32
    return %c0_i32, %c0_i32_0 : i32, i32
  }
  func.func @transform_4(%arg0: i32) -> (i32, i32) {
    %c0_i32 = arith.constant 0 : i32
    %c0_i32_0 = arith.constant 0 : i32
    %c0_i32_1 = arith.constant 0 : i32
    return %c0_i32, %c0_i32_0 : i32, i32
  }
}

</mosaic_0001>

<bundles_post_ra>
// kernel: tpu_custom_call.1
= control target key start
LH: loop header
LB: loop body
LE: loop exit
PB: predicated region body
PF: predicated region fallthrough
CT: control target
= control target key end

     0   :  { %vm61_vm0 = vcmask 261120   ;;  %vm114_vm1 = vcmask 457728   ;;  %vm198_vm2 = vcmask 1043456   ;;  %s1231_s1 = inlined_call_operand.vmem [shape: f32[112,32], index: 1, kind: input, shape index: {}]   ;;  %s1232_s0 = inlined_call_operand.vmem [shape: f32[112,32], index: 0, kind: input, shape index: {}]   ;;  %s1233_s3 = inlined_call_operand.vmem [shape: f32[56,56], index: 3, kind: input, shape index: {}]   ;;  %s1234_s2 = inlined_call_operand.vmem [shape: f32[112,32], index: 2, kind: input, shape index: {}]   ;;  %s1235_s4 = inlined_call_operand.vmem [shape: f32[112,32], index: 4, kind: output, shape index: {}]  }
   0x1   :  { %v38_v0 = vld [vmem:[%s1231_s1 + $0x30] sm:$0xff]  ;;  %v355_v1 = vld [vmem:[%s1231_s1 + $0x68] sm:$0xff]  ;;  %v36_v4 = vld [vmem:[%s1231_s1 + $0x20] sm:$0xff] }
   0x2   :  { %v60_v2 = vpack.c.bf16 %v38_v0, %v38_v0  ;;  %v377_v3 = vpack.c.bf16 %v355_v1, %v355_v1  ;;  %v37_v5 = vld [vmem:[%s1231_s1 + $0x28] sm:$0xff]  ;;  %v353_v6 = vld [vmem:[%s1231_s1 + $0x58] sm:$0xff]  ;;  %v354_v7 = vld [vmem:[%s1231_s1 + $0x60] sm:$0xff] }
   0x3   :  { %v59_v10 = vpack.c.bf16 %v37_v5, %v36_v4  ;;  %v376_v11 = vpack.c.bf16 %v354_v7, %v353_v6  ;;  %v34_v14 = vld [vmem:[%s1231_s1 + $0x10] sm:$0xff]  ;;  %v35_v15 = vld [vmem:[%s1231_s1 + $0x18] sm:$0xff]  ;;  %v351_v16 = vld [vmem:[%s1231_s1 + $0x48] sm:$0xff] }
   0x4   :  { %v84_v8 = vsel %vm61_vm0, %v60_v2, 0  ;;  %v400_v9 = vsel %vm61_vm0, %v377_v3, 0  ;;  %v352_v17 = vld [vmem:[%s1231_s1 + $0x50] sm:$0xff]  ;;  %v58_v18 = vpack.c.bf16 %v35_v15, %v34_v14  ;;  %v32_v22 = vld [vmem:[%s1231_s1] sm:$0xff]  ;;  %v33_v23 = vld [vmem:[%s1231_s1 + $0x8] sm:$0xff] }
   0x5   :  { %90 = vmatpush.bf16.xpose.msra.mxu0 %v84_v8  ;;  %406 = vmatpush.bf16.xpose.msra.mxu2 %v400_v9  ;;  %v81_v12 = vsel %vm61_vm0, %v59_v10, 0  ;;  %v397_v13 = vsel %vm61_vm0, %v376_v11, 0  ;;  %v375_v19 = vpack.c.bf16 %v352_v17, %v351_v16  ;;  %v349_v24 = vld [vmem:[%s1231_s1 + $0x38] sm:$0xff]  ;;  %v350_v25 = vld [vmem:[%s1231_s1 + $0x40] sm:$0xff]  ;;  %v57_v26 = vpack.c.bf16 %v33_v23, %v32_v22  ;;  %v26_v29 = vld [vmem:[%s1232_s0 + $0x8] sm:$0xff] }
   0x6   :  { %v78_v20 = vsel %vm61_vm0, %v58_v18, 0  ;;  %v374_v27 = vpack.c.bf16 %v350_v25, %v349_v24  ;;  %v25_v28 = vld [vmem:[%s1232_s0] sm:$0xff]  ;;  %v342_v30 = vld [vmem:[%s1232_s0 + $0x38] sm:$0xff]  ;;  %v47_v35 = vmul.f32 0.17677669, %v26_v29  ;;  %v27_v40 = vld [vmem:[%s1232_s0 + $0x10] sm:$0xff] }
   0x7   :  { %v394_v21 = vsel %vm61_vm0, %v375_v19, 0  ;;  %v343_v31 = vld [vmem:[%s1232_s0 + $0x40] sm:$0xff]  ;;  %v75_v32 = vsel %vm61_vm0, %v57_v26, 0  ;;  %v46_v34 = vmul.f32 0.17677669, %v25_v28  ;;  %v28_v41 = vld [vmem:[%s1232_s0 + $0x18] sm:$0xff] }
   0x8   :  { %v391_v33 = vsel %vm61_vm0, %v374_v27, 0  ;;  %v363_v36 = vmul.f32 0.17677669, %v342_v30  ;;  %v364_v37 = vmul.f32 0.17677669, %v343_v31  ;;  %v344_v42 = vld [vmem:[%s1232_s0 + $0x48] sm:$0xff] }
   0x9   :  { %v53_v38 = vpack.c.bf16 %v47_v35, %v46_v34  ;;  %v345_v43 = vld [vmem:[%s1232_s0 + $0x50] sm:$0xff]  ;;  %v48_v44 = vmul.f32 0.17677669, %v27_v40  ;;  %v49_v45 = vmul.f32 0.17677669, %v28_v41  ;;  %v29_v50 = vld [vmem:[%s1232_s0 + $0x20] sm:$0xff] }
   0xa   :  { %v370_v39 = vpack.c.bf16 %v364_v37, %v363_v36  ;;  %v365_v46 = vmul.f32 0.17677669, %v344_v42  ;;  %v366_v47 = vmul.f32 0.17677669, %v345_v43  ;;  %v30_v51 = vld [vmem:[%s1232_s0 + $0x28] sm:$0xff]  ;;  %v346_v52 = vld [vmem:[%s1232_s0 + $0x58] sm:$0xff] }
   0xb   :  { %v54_v48 = vpack.c.bf16 %v49_v45, %v48_v44  ;;  %v347_v53 = vld [vmem:[%s1232_s0 + $0x60] sm:$0xff]  ;;  %v50_v54 = vmul.f32 0.17677669, %v29_v50  ;;  %v51_v55 = vmul.f32 0.17677669, %v30_v51  ;;  %v31_v60 = vld [vmem:[%s1232_s0 + $0x30] sm:$0xff] }
   0xc   :  { %v371_v49 = vpack.c.bf16 %v366_v47, %v365_v46  ;;  %v367_v56 = vmul.f32 0.17677669, %v346_v52  ;;  %v368_v57 = vmul.f32 0.17677669, %v347_v53  ;;  %v348_v61 = vld [vmem:[%s1232_s0 + $0x68] sm:$0xff]  ;;  %v18_v2 = vld [vmem:[%s1233_s3] sm:$0xff] }
   0xd   :  { %91 = vmatpush.bf16.xpose.msra.mxu0 %v81_v12  ;;  %407 = vmatpush.bf16.xpose.msra.mxu2 %v397_v13  ;;  %v55_v58 = vpack.c.bf16 %v51_v55, %v50_v54  ;;  %v52_v62 = vmul.f32 0.17677669, %v31_v60  ;;  %v369_v63 = vmul.f32 0.17677669, %v348_v61  ;;  %v19_v7 = vld [vmem:[%s1233_s3 + $0x8] sm:$0xff]  ;;  %v20_v15 = vld [vmem:[%s1233_s3 + $0x10] sm:$0xff] }
   0xe   :  { %v372_v59 = vpack.c.bf16 %v368_v57, %v367_v56  ;;  %v22_v28 = vld [vmem:[%s1233_s3 + $0x20] sm:$0xff]  ;;  %v24_v41 = vld [vmem:[%s1233_s3 + $0x30] sm:$0xff]  ;;  %v44_v57 = vld [vmem:[%s1234_s2 + $0x28] sm:$0xff] }
   0xf   :  { %v56_v0 = vpack.c.bf16 %v52_v62, %v52_v62  ;;  %v373_v1 = vpack.c.bf16 %v369_v63, %v369_v63  ;;  %v45_v53 = vld [vmem:[%s1234_s2 + $0x30] sm:$0xff]  ;;  %v43_v56 = vld [vmem:[%s1234_s2 + $0x20] sm:$0xff]  ;;  %v42_v63 = vld [vmem:[%s1234_s2 + $0x18] sm:$0xff] }
  0x10   :  { %v185_v54 = vpack.c.bf16 %v45_v53, %v45_v53  ;;  %v41_v62 = vld [vmem:[%s1234_s2 + $0x10] sm:$0xff] }
  0x12   :  { %v200_v55 = vsel %vm198_vm2, %v185_v54, 0 }
  0x13   :  { %206 = vmatpush.bf16.msra.mxu1 %v200_v55 }
  0x15   :  { %92 = vmatpush.bf16.xpose.msra.mxu0 %v78_v20  ;;  %408 = vmatpush.bf16.xpose.msra.mxu2 %v394_v21  ;;  %v21_v20 = vld [vmem:[%s1233_s3 + $0x18] sm:$0xff] }
  0x1d   :  { %93 = vmatpush.bf16.xpose.msra.mxu0 %v75_v32  ;;  %409 = vmatpush.bf16.xpose.msra.mxu2 %v391_v33 }
  0x24   :  { %660 = vmatmul.msk.bf16.vlgmr.msra.gmra.mxu0 %vm61_vm0, %v53_v38  ;;  %668 = vmatmul.msk.bf16.vlgmr.msra.gmra.mxu2 %vm61_vm0, %v370_v39  ;;  %v23_v38 = vld [vmem:[%s1233_s3 + $0x28] sm:$0xff] }
  0x34   :  { %661 = vmatmul.msk.bf16.gmra.mxu0 %vm61_vm0, %v54_v48  ;;  %669 = vmatmul.msk.bf16.gmra.mxu2 %vm61_vm0, %v371_v49 }
  0x44   :  { %662 = vmatmul.msk.bf16.gmra.mxu0 %vm61_vm0, %v55_v58  ;;  %670 = vmatmul.msk.bf16.gmra.mxu2 %vm61_vm0, %v372_v59  ;;  %v184_v58 = vpack.c.bf16 %v44_v57, %v43_v56  ;;  %v362_v59 = vld [vmem:[%s1234_s2 + $0x68] sm:$0xff] }
  0x45   :  { %v500_v60 = vpack.c.bf16 %v362_v59, %v362_v59 }
  0x46   :  { %207 = vmatpush.bf16.msra.mxu1 %v184_v58 }
  0x47   :  { %v514_v61 = vsel %vm198_vm2, %v500_v60, 0 }
  0x48   :  { %520 = vmatpush.bf16.msra.mxu3 %v514_v61 }
  0x54   :  { %663 = vmatmul.msk.bf16.gmra.mxu0 %vm61_vm0, %v56_v0  ;;  %671 = vmatmul.msk.bf16.gmra.mxu2 %vm61_vm0, %v373_v1  ;;  %v183_v0 = vpack.c.bf16 %v42_v63, %v41_v62  ;;  %v360_v1 = vld [vmem:[%s1234_s2 + $0x58] sm:$0xff] }
  0x56   :  { %208 = vmatpush.bf16.msra.mxu1 %v183_v0 }
  0xa1   :  { %v95_v3 = vpop.f32.mrf.mxu0 }
  0xa2   :  { %v860_v4 = vadd.f32 %v95_v3, %v18_v2 }
  0xa4   :  { %v115_v5 = vsel %vm114_vm1, %v860_v4, -inf }
  0xa5   :  { %116 = vmax.xlane.f32.xlu1 %v115_v5  ;;  %v39_v5 = vld [vmem:[%s1234_s2] sm:$0xff] }
  0xa7   :  { %v411_v6 = vpop.f32.mrf.mxu2 }
  0xa8   :  { %v867_v8 = vadd.f32 %v411_v6, %v18_v2  ;;  %v361_v2 = vld [vmem:[%s1234_s2 + $0x60] sm:$0xff]  ;;  %v40_v6 = vld [vmem:[%s1234_s2 + $0x8] sm:$0xff] }
  0xa9   :  { %v97_v9 = vpop.f32.mrf.mxu0  ;;  %v499_v3 = vpack.c.bf16 %v361_v2, %v360_v1 }
  0xaa   :  { %v869_v10 = vadd.f32 %v97_v9, %v19_v7  ;;  %v430_v11 = vsel %vm114_vm1, %v867_v8, -inf  ;;  %v358_v9 = vld [vmem:[%s1234_s2 + $0x48] sm:$0xff] }
  0xab   :  { %431 = vmax.xlane.f32.xlu0 %v430_v11  ;;  %521 = vmatpush.bf16.msra.mxu3 %v499_v3  ;;  %v359_v11 = vld [vmem:[%s1234_s2 + $0x50] sm:$0xff] }
  0xac   :  { %v118_v12 = vsel %vm114_vm1, %v869_v10, -inf }
  0xad   :  { %119 = vmax.xlane.f32.xlu1 %v118_v12  ;;  %v498_v12 = vpack.c.bf16 %v359_v11, %v358_v9 }
  0xaf   :  { %v413_v13 = vpop.f32.mrf.mxu2  ;;  %522 = vmatpush.bf16.msra.mxu3 %v498_v12 }
  0xb0   :  { %v875_v14 = vadd.f32 %v413_v13, %v19_v7  ;;  %v182_v7 = vpack.c.bf16 %v40_v6, %v39_v5  ;;  %v356_v13 = vld [vmem:[%s1234_s2 + $0x38] sm:$0xff] }
  0xb1   :  { %v100_v16 = vpop.f32.mrf.mxu0 }
  0xb2   :  { %v433_v17 = vsel %vm114_vm1, %v875_v14, -inf  ;;  %v882_v18 = vadd.f32 %v100_v16, %v20_v15  ;;  %209 = vmatpush.bf16.msra.mxu1 %v182_v7 }
  0xb3   :  { %434 = vmax.xlane.f32.xlu0 %v433_v17 }
  0xb4   :  { %v121_v22 = vsel %vm114_vm1, %v882_v18, -inf }
  0xb7   :  { %v416_v19 = vpop.f32.mrf.mxu2 }
  0xb8   :  { %v887_v21 = vadd.f32 %v416_v19, %v20_v15  ;;  %v357_v15 = vld [vmem:[%s1234_s2 + $0x40] sm:$0xff] }
  0xb9   :  { %v102_v23 = vpop.f32.mrf.mxu0  ;;  %v497_v16 = vpack.c.bf16 %v357_v15, %v356_v13 }
  0xba   :  { %v891_v24 = vadd.f32 %v102_v23, %v21_v20  ;;  %v436_v25 = vsel %vm114_vm1, %v887_v21, -inf }
  0xbb   :  { %437 = vmax.xlane.f32.xlu2 %v436_v25  ;;  %122 = vmax.xlane.f32.xlu0 %v121_v22 }
  0xbc   :  { %v124_v26 = vsel %vm114_vm1, %v891_v24, -inf  ;;  %523 = vmatpush.bf16.msra.mxu3 %v497_v16 }
  0xbd   :  { %125 = vmax.xlane.f32.xlu1 %v124_v26 }
  0xbf   :  { %v418_v27 = vpop.f32.mrf.mxu2 }
  0xc0   :  { %v900_v29 = vadd.f32 %v418_v27, %v21_v20 }
  0xc1   :  { %v105_v30 = vpop.f32.mrf.mxu0 }
  0xc2   :  { %v902_v31 = vadd.f32 %v105_v30, %v22_v28  ;;  %v439_v32 = vsel %vm114_vm1, %v900_v29, -inf }
  0xc3   :  { %440 = vmax.xlane.f32.xlu2 %v439_v32 }
  0xc4   :  { %v127_v33 = vsel %vm114_vm1, %v902_v31, -inf }
  0xc5   :  { %128 = vmax.xlane.f32.xlu1 %v127_v33 }
  0xc7   :  { %v421_v34 = vpop.f32.mrf.mxu2 }
  0xc8   :  { %v908_v35 = vadd.f32 %v421_v34, %v22_v28 }
  0xc9   :  { %v107_v36 = vpop.f32.mrf.mxu0 }
  0xca   :  { %v442_v37 = vsel %vm114_vm1, %v908_v35, -inf  ;;  %v915_v39 = vadd.f32 %v107_v36, %v23_v38 }
  0xcb   :  { %443 = vmax.xlane.f32.xlu2 %v442_v37 }
  0xcc   :  { %v130_v45 = vsel %vm114_vm1, %v915_v39, -inf }
  0xcf   :  { %v423_v40 = vpop.f32.mrf.mxu2 }
  0xd0   :  { %v920_v42 = vadd.f32 %v423_v40, %v23_v38 }
  0xd1   :  { %v110_v43 = vpop.f32.mrf.mxu0 }
  0xd2   :  { %v922_v44 = vadd.f32 %v110_v43, %v24_v41  ;;  %v445_v46 = vsel %vm114_vm1, %v920_v42, -inf }
  0xd3   :  { %131 = vmax.xlane.f32.xlu2 %v130_v45  ;;  %446 = vmax.xlane.f32.xlu0 %v445_v46 }
  0xd4   :  { %v133_v47 = vsel %vm114_vm1, %v922_v44, -inf }
  0xd5   :  { %134 = vmax.xlane.f32.xlu1 %v133_v47 }
  0xd7   :  { %v426_v48 = vpop.f32.mrf.mxu2 }
  0xd8   :  { %v930_v49 = vadd.f32 %v426_v48, %v24_v41 }
  0xd9   :  { %v112_v50 = vpop.f32.mrf.mxu0 }
  0xda   :  { %v448_v51 = vsel %vm114_vm1, %v930_v49, -inf }
  0xdb   :  { %449 = vmax.xlane.f32.xlu0 %v448_v51 }
  0xdf   :  { %v428_v52 = vpop.f32.mrf.mxu2 }
 0x118   :  { %v117_v17 = vpop.xlane.xlu1 %116 }
 0x119   :  { %v136_v19 = vsub.f32 %v860_v4, %v117_v17 }
 0x11b   :  { %v143_v20 = vmul.f32 1.442695, %v136_v19 }
 0x11d   :  { %676 = vpow2.f32 %v143_v20 }
 0x11e   :  { %v432_v22 = vpop.xlane.xlu0 %431 }
 0x11f   :  { %v451_v23 = vsub.f32 %v867_v8, %v432_v22 }
 0x120   :  { %v120_v25 = vpop.xlane.xlu1 %119 }
 0x121   :  { %v458_v26 = vmul.f32 1.442695, %v451_v23  ;;  %v137_v27 = vsub.f32 %v869_v10, %v120_v25 }
 0x123   :  { %v677_v28 = vpop.eup %676  ;;  %678 = vpow2.f32 %v458_v26  ;;  %v145_v30 = vmul.f32 1.442695, %v137_v27 }
 0x124   :  { %v157_v32 = vsel %vm114_vm1, %v677_v28, 0.0 }
 0x125   :  { %680 = vpow2.f32 %v145_v30  ;;  %158 = vadd.xlane.f32.xlu2 %v157_v32 }
 0x126   :  { %v435_v33 = vpop.xlane.xlu0 %434 }
 0x127   :  { %v452_v34 = vsub.f32 %v875_v14, %v435_v33 }
 0x129   :  { %v679_v4 = vpop.eup %678  ;;  %v460_v36 = vmul.f32 1.442695, %v452_v34 }
 0x12a   :  { %v472_v37 = vsel %vm114_vm1, %v679_v4, 0.0 }
 0x12b   :  { %v681_v38 = vpop.eup %680  ;;  %682 = vpow2.f32 %v460_v36  ;;  %473 = vadd.xlane.f32.xlu0 %v472_v37 }
 0x12c   :  { %v178_v8 = vpack.c.bf16 %v681_v38, %v677_v28  ;;  %v160_v51 = vsel %vm114_vm1, %v681_v38, 0.0 }
 0x12e   :  { %v438_v40 = vpop.xlane.xlu2 %437  ;;  %v123_v10 = vpop.xlane.xlu0 %122  ;;  %664 = vmatmul.msk.bf16.vlgmr.msra.gmra.mxu1 %vm114_vm1, %v178_v8 }
 0x12f   :  { %v453_v41 = vsub.f32 %v887_v21, %v438_v40  ;;  %v138_v43 = vsub.f32 %v882_v18, %v123_v10 }
 0x130   :  { %v126_v45 = vpop.xlane.xlu1 %125 }
 0x131   :  { %v683_v46 = vpop.eup %682  ;;  %v462_v47 = vmul.f32 1.442695, %v453_v41  ;;  %v147_v14 = vmul.f32 1.442695, %v138_v43  ;;  %v139_v48 = vsub.f32 %v891_v24, %v126_v45 }
 0x132   :  { %v475_v50 = vsel %vm114_vm1, %v683_v46, 0.0  ;;  %v493_v52 = vpack.c.bf16 %v683_v46, %v679_v4 }
 0x133   :  { %684 = vpow2.f32 %v462_v47  ;;  %v149_v53 = vmul.f32 1.442695, %v139_v48  ;;  %476 = vadd.xlane.f32.xlu1 %v475_v50  ;;  %161 = vadd.xlane.f32.xlu0 %v160_v51 }
 0x134   :  { %686 = vpow2.f32 %v147_v14  ;;  %672 = vmatmul.msk.bf16.vlgmr.msra.gmra.mxu3 %vm114_vm1, %v493_v52 }
 0x135   :  { %688 = vpow2.f32 %v149_v53 }
 0x136   :  { %v441_v18 = vpop.xlane.xlu2 %440 }
 0x137   :  { %v454_v21 = vsub.f32 %v900_v29, %v441_v18 }
 0x138   :  { %v129_v54 = vpop.xlane.xlu1 %128 }
 0x139   :  { %v685_v55 = vpop.eup %684  ;;  %v464_v56 = vmul.f32 1.442695, %v454_v21  ;;  %v140_v24 = vsub.f32 %v902_v31, %v129_v54 }
 0x13a   :  { %v687_v57 = vpop.eup %686  ;;  %v478_v58 = vsel %vm114_vm1, %v685_v55, 0.0 }
 0x13b   :  { %v689_v59 = vpop.eup %688  ;;  %690 = vpow2.f32 %v464_v56  ;;  %v163_v60 = vsel %vm114_vm1, %v687_v57, 0.0  ;;  %479 = vadd.xlane.f32.xlu2 %v478_v58  ;;  %v151_v62 = vmul.f32 1.442695, %v140_v24 }
 0x13c   :  { %164 = vadd.xlane.f32.xlu1 %v163_v60  ;;  %v179_v61 = vpack.c.bf16 %v689_v59, %v687_v57  ;;  %v166_v1 = vsel %vm114_vm1, %v689_v59, 0.0 }
 0x13d   :  { %692 = vpow2.f32 %v151_v62 }
 0x13e   :  { %v444_v63 = vpop.xlane.xlu2 %443  ;;  %665 = vmatmul.msk.bf16.gmra.mxu1 %vm114_vm1, %v179_v61 }
 0x13f   :  { %v455_v0 = vsub.f32 %v908_v35, %v444_v63 }
 0x141   :  { %v691_v29 = vpop.eup %690  ;;  %v466_v3 = vmul.f32 1.442695, %v455_v0 }
 0x142   :  { %v481_v31 = vsel %vm114_vm1, %v691_v29, 0.0  ;;  %v494_v2 = vpack.c.bf16 %v691_v29, %v685_v55 }
 0x143   :  { %482 = vadd.xlane.f32.xlu0 %v481_v31  ;;  %167 = vadd.xlane.f32.xlu2 %v166_v1  ;;  %v693_v7 = vpop.eup %692  ;;  %694 = vpow2.f32 %v466_v3 }
 0x144   :  { %673 = vmatmul.msk.bf16.gmra.mxu3 %vm114_vm1, %v494_v2  ;;  %v169_v16 = vsel %vm114_vm1, %v693_v7, 0.0 }
 0x146   :  { %v132_v5 = vpop.xlane.xlu2 %131  ;;  %v447_v6 = vpop.xlane.xlu0 %446 }
 0x147   :  { %v141_v9 = vsub.f32 %v915_v39, %v132_v5  ;;  %v456_v11 = vsub.f32 %v920_v42, %v447_v6 }
 0x148   :  { %v135_v12 = vpop.xlane.xlu1 %134 }
 0x149   :  { %v153_v13 = vmul.f32 1.442695, %v141_v9  ;;  %v468_v35 = vmul.f32 1.442695, %v456_v11  ;;  %v142_v15 = vsub.f32 %v922_v44, %v135_v12  ;;  %v695_v22 = vpop.eup %694 }
 0x14b   :  { %696 = vpow2.f32 %v153_v13  ;;  %v155_v17 = vmul.f32 1.442695, %v142_v15  ;;  %170 = vadd.xlane.f32.xlu0 %v169_v16 }
 0x14c   :  { %698 = vpow2.f32 %v468_v35 }
 0x14d   :  { %700 = vpow2.f32 %v155_v17 }
 0x14e   :  { %v450_v19 = vpop.xlane.xlu0 %449 }
 0x14f   :  { %v457_v20 = vsub.f32 %v930_v49, %v450_v19  ;;  %v484_v49 = vsel %vm114_vm1, %v695_v22, 0.0 }
 0x151   :  { %v697_v39 = vpop.eup %696  ;;  %v470_v23 = vmul.f32 1.442695, %v457_v20 }
 0x152   :  { %v699_v42 = vpop.eup %698  ;;  %v172_v25 = vsel %vm114_vm1, %v697_v39, 0.0  ;;  %v180_v26 = vpack.c.bf16 %v697_v39, %v693_v7 }
 0x153   :  { %v701_v27 = vpop.eup %700  ;;  %702 = vpow2.f32 %v470_v23  ;;  %173 = vadd.xlane.f32.xlu1 %v172_v25  ;;  %v495_v44 = vpack.c.bf16 %v699_v42, %v695_v22  ;;  %v487_v33 = vsel %vm114_vm1, %v699_v42, 0.0 }
 0x154   :  { %666 = vmatmul.msk.bf16.gmra.mxu1 %vm114_vm1, %v180_v26  ;;  %v175_v28 = vsel %vm114_vm1, %v701_v27, 0.0  ;;  %v181_v34 = vpack.c.bf16 %v701_v27, %v701_v27 }
 0x155   :  { %674 = vmatmul.msk.bf16.gmra.mxu3 %vm114_vm1, %v495_v44  ;;  %176 = vadd.xlane.f32.xlu2 %v175_v28 }
 0x159   :  { %v703_v30 = vpop.eup %702 }
 0x15a   :  { %v490_v32 = vsel %vm114_vm1, %v703_v30, 0.0  ;;  %v496_v4 = vpack.c.bf16 %v703_v30, %v703_v30 }
 0x15b   :  { %485 = vadd.xlane.f32.xlu1 %v484_v49  ;;  %491 = vadd.xlane.f32.xlu0 %v490_v32 }
 0x15d   :  { %488 = vadd.xlane.f32.xlu2 %v487_v33 }
 0x164   :  { %667 = vmatmul.msk.bf16.gmra.mxu1 %vm114_vm1, %v181_v34 }
 0x165   :  { %675 = vmatmul.msk.bf16.gmra.mxu3 %vm114_vm1, %v496_v4 }
 0x198   :  { %v159_v36 = vpop.xlane.xlu2 %158 }
 0x199   :  { %704 = vrcp.f32 %v159_v36  ;;  %v241_v43 = vand.u32 2147483648, %v159_v36  ;;  %vm235_vm4 = vweird.f32 %v159_v36  ;;  %v239_v48 = vand.u32 2147483647, %v159_v36 }
 0x19b   :  { %v242_v52 = vor.u32 1.1754944e-38, %v241_v43  ;;  %vm240_vm6 = vcmp.eq.f32.partialorder %v239_v48, 8.507059e+37 }
 0x19e   :  { %v474_v37 = vpop.xlane.xlu0 %473 }
 0x19f   :  { %v705_v38 = vpop.eup %704  ;;  %706 = vrcp.f32 %v474_v37  ;;  %vm549_vm8 = vweird.f32 %v474_v37  ;;  %v555_v62 = vand.u32 2147483648, %v474_v37  ;;  %v553_v31 = vand.u32 2147483647, %v474_v37 }
 0x1a0   :  { %v231_v8 = vmul.f32 %v705_v38, %v159_v36  ;;  %vm236_vm3 = vweird.f32 %v705_v38 }
 0x1a1   :  { %vm237_vm5 = vmor %vm235_vm4, %vm236_vm3  ;;  %v556_v9 = vor.u32 1.1754944e-38, %v555_v62  ;;  %vm554_vm14 = vcmp.eq.f32.partialorder %v553_v31, 8.507059e+37 }
 0x1a2   :  { %v232_v40 = vsub.f32 1.0, %v231_v8 }
 0x1a4   :  { %v233_v10 = vmul.f32 %v705_v38, %v232_v40 }
 0x1a5   :  { %v707_v41 = vpop.eup %706 }
 0x1a6   :  { %v545_v45 = vmul.f32 %v707_v41, %v474_v37  ;;  %v162_v46 = vpop.xlane.xlu0 %161  ;;  %v1012_v47 = vpop.xlane.xlu1 %476  ;;  %v234_v14 = vadd.f32 %v705_v38, %v233_v10  ;;  %vm550_vm7 = vweird.f32 %v707_v41 }
 0x1a7   :  { %708 = vrcp.f32 %v162_v46  ;;  %v253_v29 = vand.u32 2147483647, %v162_v46  ;;  %v255_v0 = vand.u32 2147483648, %v162_v46  ;;  %vm1029_vm10 = vmor %vm549_vm8, %vm550_vm7  ;;  %vm249_vm11 = vweird.f32 %v162_v46 }
 0x1a8   :  { %v546_v50 = vsub.f32 1.0, %v545_v45  ;;  %710 = vrcp.f32 %v1012_v47  ;;  %v238_v51 = vsel %vm237_vm5, %v705_v38, %v234_v14  ;;  %v569_v44 = vand.u32 2147483648, %v1012_v47 }
 0x1a9   :  { %v243_v18 = vsel %vm240_vm6, %v242_v52, %v238_v51  ;;  %vm254_vm13 = vcmp.eq.f32.partialorder %v253_v29, 8.507059e+37  ;;  %v256_v12 = vor.u32 1.1754944e-38, %v255_v0  ;;  %vm563_vm1 = vweird.f32 %v1012_v47 }
 0x1aa   :  { %v547_v21 = vmul.f32 %v707_v41, %v546_v50  ;;  %v567_v49 = vand.u32 2147483647, %v1012_v47  ;;  %v570_v38 = vor.u32 1.1754944e-38, %v569_v44 }
 0x1ab   :  { %v211_v53 = vpop.f32.mrf.mxu1 }
 0x1ac   :  { %v328_v54 = vmul.f32 %v243_v18, %v211_v53  ;;  %v548_v60 = vadd.f32 %v707_v41, %v547_v21  ;;  %vm568_vm7 = vcmp.eq.f32.partialorder %v567_v49, 8.507059e+37 }
 0x1ad   :  { %v709_v55 = vpop.eup %708 }
 0x1ae   :  { %v1015_v56 = vpop.eup %710  ;;  %v245_v24 = vmul.f32 %v709_v55, %v162_v46  ;;  %335 = vst.msk [vmem:[%s1235_s4] sm:$0xff] %vm61_vm0, %v328_v54  ;;  %v1021_v57 = vpop.xlane.xlu2 %479  ;;  %vm250_vm9 = vweird.f32 %v709_v55  ;;  %v552_v3 = vsel %vm1029_vm10, %v707_v41, %v548_v60 }
 0x1af   :  { %v559_v58 = vmul.f32 %v1015_v56, %v1012_v47  ;;  %712 = vrcp.f32 %v1021_v57  ;;  %v1026_v59 = vpop.xlane.xlu1 %164  ;;  %vm251_vm12 = vmor %vm249_vm11, %vm250_vm9  ;;  %v557_v19 = vsel %vm554_vm14, %v556_v9, %v552_v3  ;;  %vm564_vm15 = vweird.f32 %v1015_v56 }
 0x1b0   :  { %v246_v61 = vsub.f32 1.0, %v245_v24  ;;  %714 = vrcp.f32 %v1026_v59  ;;  %v267_v28 = vand.u32 2147483647, %v1026_v59  ;;  %v269_v30 = vand.u32 2147483648, %v1026_v59  ;;  %vm1064_vm3 = vmor %vm563_vm1, %vm564_vm15 }
 0x1b1   :  { %v560_v63 = vsub.f32 1.0, %v559_v58  ;;  %vm263_vm4 = vweird.f32 %v1026_v59  ;;  %v583_v21 = vand.u32 2147483648, %v1021_v57  ;;  %vm577_vm9 = vweird.f32 %v1021_v57 }
 0x1b2   :  { %v247_v1 = vmul.f32 %v709_v55, %v246_v61  ;;  %vm268_vm6 = vcmp.eq.f32.partialorder %v267_v28, 8.507059e+37  ;;  %v270_v41 = vor.u32 1.1754944e-38, %v269_v30 }
 0x1b3   :  { %v561_v5 = vmul.f32 %v1015_v56, %v560_v63  ;;  %v213_v6 = vpop.f32.mrf.mxu1 }
 0x1b4   :  { %v248_v7 = vadd.f32 %v709_v55, %v247_v1 }
 0x1b5   :  { %v1036_v11 = vpop.eup %712  ;;  %v562_v23 = vadd.f32 %v1015_v56, %v561_v5 }
 0x1b6   :  { %v715_v13 = vpop.eup %714  ;;  %v573_v35 = vmul.f32 %v1036_v11, %v1021_v57  ;;  %v252_v15 = vsel %vm251_vm12, %v709_v55, %v248_v7  ;;  %v1040_v16 = vpop.xlane.xlu0 %482  ;;  %vm578_vm8 = vweird.f32 %v1036_v11  ;;  %v581_v55 = vand.u32 2147483647, %v1021_v57 }
 0x1b7   :  { %v1042_v17 = vpop.xlane.xlu2 %167  ;;  %v259_v20 = vmul.f32 %v715_v13, %v1026_v59  ;;  %v257_v22 = vsel %vm254_vm13, %v256_v12, %v252_v15  ;;  %716 = vrcp.f32 %v1040_v16  ;;  %v525_v39 = vpop.f32.mrf.mxu3  ;;  %vm264_vm2 = vweird.f32 %v715_v13  ;;  %vm1096_vm11 = vmor %vm577_vm9, %vm578_vm8 }
 0x1b8   :  { %v574_v42 = vsub.f32 1.0, %v573_v35  ;;  %v329_v25 = vmul.f32 %v257_v22, %v213_v6  ;;  %718 = vrcp.f32 %v1042_v17  ;;  %v642_v26 = vmul.f32 %v557_v19, %v525_v39  ;;  %vm265_vm5 = vmor %vm263_vm4, %vm264_vm2 }
 0x1b9   :  { %v260_v27 = vsub.f32 1.0, %v259_v20  ;;  %v566_v34 = vsel %vm1064_vm3, %v1015_v56, %v562_v23  ;;  %v283_v54 = vand.u32 2147483648, %v1042_v17  ;;  %v281_v24 = vand.u32 2147483647, %v1042_v17 }
 0x1ba   :  { %336 = vst.msk [vmem:[%s1235_s4 + $0x8] sm:$0xff] %vm61_vm0, %v329_v25  ;;  %v575_v4 = vmul.f32 %v1036_v11, %v574_v42  ;;  %v571_v14 = vsel %vm568_vm7, %v570_v38, %v566_v34  ;;  %vm277_vm12 = vweird.f32 %v1042_v17  ;;  %v584_v57 = vor.u32 1.1754944e-38, %v583_v21 }
 0x1bb   :  { %649 = vst.msk [vmem:[%s1235_s4 + $0x38] sm:$0xff] %vm61_vm0, %v642_v26  ;;  %v261_v32 = vmul.f32 %v715_v13, %v260_v27  ;;  %v216_v10 = vpop.f32.mrf.mxu1  ;;  %v284_v29 = vor.u32 1.1754944e-38, %v283_v54  ;;  %vm582_vm14 = vcmp.eq.f32.partialorder %v581_v55, 8.507059e+37  ;;  %vm282_vm15 = vcmp.eq.f32.partialorder %v281_v24, 8.507059e+37 }
 0x1bc   :  { %v576_v51 = vadd.f32 %v1036_v11, %v575_v4  ;;  %vm591_vm2 = vweird.f32 %v1040_v16  ;;  %v595_v15 = vand.u32 2147483647, %v1040_v16 }
 0x1bd   :  { %v1072_v36 = vpop.eup %716  ;;  %v262_v37 = vadd.f32 %v715_v13, %v261_v32 }
 0x1be   :  { %v719_v8 = vpop.eup %718  ;;  %v587_v40 = vmul.f32 %v1072_v36, %v1040_v16  ;;  %v1077_v43 = vpop.xlane.xlu0 %170  ;;  %v580_v59 = vsel %vm1096_vm11, %v1036_v11, %v576_v51  ;;  %vm592_vm1 = vweird.f32 %v1072_v36  ;;  %vm596_vm7 = vcmp.eq.f32.partialorder %v595_v15, 8.507059e+37 }
 0x1bf   :  { %v273_v45 = vmul.f32 %v719_v8, %v1042_v17  ;;  %v266_v46 = vsel %vm265_vm5, %v715_v13, %v262_v37  ;;  %720 = vrcp.f32 %v1077_v43  ;;  %v527_v47 = vpop.f32.mrf.mxu3  ;;  %vm278_vm10 = vweird.f32 %v719_v8  ;;  %vm1126_vm4 = vmor %vm591_vm2, %vm592_vm1 }
 0x1c0   :  { %v271_v48 = vsel %vm268_vm6, %v270_v41, %v266_v46  ;;  %v643_v50 = vmul.f32 %v571_v14, %v527_v47  ;;  %v588_v52 = vsub.f32 1.0, %v587_v40  ;;  %vm279_vm13 = vmor %vm277_vm12, %vm278_vm10  ;;  %v585_v2 = vsel %vm582_vm14, %v584_v57, %v580_v59 }
 0x1c1   :  { %v274_v53 = vsub.f32 1.0, %v273_v45  ;;  %v330_v18 = vmul.f32 %v271_v48, %v216_v10  ;;  %v597_v13 = vand.u32 2147483648, %v1040_v16  ;;  %v297_v17 = vand.u32 2147483648, %v1077_v43 }
 0x1c2   :  { %650 = vst.msk [vmem:[%s1235_s4 + $0x40] sm:$0xff] %vm61_vm0, %v643_v50  ;;  %v589_v62 = vmul.f32 %v1072_v36, %v588_v52  ;;  %vm291_vm5 = vweird.f32 %v1077_v43  ;;  %v295_v23 = vand.u32 2147483647, %v1077_v43 }
 0x1c3   :  { %337 = vst.msk [vmem:[%s1235_s4 + $0x10] sm:$0xff] %vm61_vm0, %v330_v18  ;;  %v275_v56 = vmul.f32 %v719_v8, %v274_v53  ;;  %v218_v5 = vpop.f32.mrf.mxu1  ;;  %v598_v26 = vor.u32 1.1754944e-38, %v597_v13  ;;  %v298_v49 = vor.u32 1.1754944e-38, %v297_v17 }
 0x1c4   :  { %v590_v12 = vadd.f32 %v1072_v36, %v589_v62  ;;  %vm296_vm8 = vcmp.eq.f32.partialorder %v295_v23, 8.507059e+37 }
 0x1c5   :  { %v721_v60 = vpop.eup %720  ;;  %v276_v61 = vadd.f32 %v719_v8, %v275_v56 }
 0x1c6   :  { %v287_v63 = vmul.f32 %v721_v60, %v1077_v43  ;;  %v1106_v0 = vpop.xlane.xlu1 %173  ;;  %vm292_vm3 = vweird.f32 %v721_v60  ;;  %v594_v39 = vsel %vm1126_vm4, %v1072_v36, %v590_v12 }
 0x1c7   :  { %v280_v31 = vsel %vm279_vm13, %v719_v8, %v276_v61  ;;  %722 = vrcp.f32 %v1106_v0  ;;  %v530_v1 = vpop.f32.mrf.mxu3  ;;  %vm1140_vm6 = vmor %vm291_vm5, %vm292_vm3  ;;  %v599_v34 = vsel %vm596_vm7, %v598_v26, %v594_v39  ;;  %v311_v41 = vand.u32 2147483648, %v1106_v0 }
 0x1c8   :  { %v288_v3 = vsub.f32 1.0, %v287_v63  ;;  %v285_v6 = vsel %vm282_vm15, %v284_v29, %v280_v31  ;;  %v644_v7 = vmul.f32 %v585_v2, %v530_v1  ;;  %v1109_v9 = vpop.xlane.xlu2 %176  ;;  %v309_v43 = vand.u32 2147483647, %v1106_v0 }
 0x1c9   :  { %v331_v11 = vmul.f32 %v285_v6, %v218_v5  ;;  %724 = vrcp.f32 %v1109_v9  ;;  %vm305_vm10 = vweird.f32 %v1106_v0  ;;  %v312_v18 = vor.u32 1.1754944e-38, %v311_v41 }
 0x1ca   :  { %651 = vst.msk [vmem:[%s1235_s4 + $0x48] sm:$0xff] %vm61_vm0, %v644_v7  ;;  %v289_v35 = vmul.f32 %v721_v60, %v288_v3  ;;  %vm310_vm12 = vcmp.eq.f32.partialorder %v309_v43, 8.507059e+37  ;;  %v323_v55 = vand.u32 2147483647, %v1109_v9  ;;  %v325_v56 = vand.u32 2147483648, %v1109_v9 }
 0x1cb   :  { %338 = vst.msk [vmem:[%s1235_s4 + $0x18] sm:$0xff] %vm61_vm0, %v331_v11  ;;  %vm319_vm1 = vweird.f32 %v1109_v9 }
 0x1cc   :  { %v290_v20 = vadd.f32 %v721_v60, %v289_v35  ;;  %vm1198_vm4 = vcmp.eq.f32.partialorder %v323_v55, 8.507059e+37  ;;  %v326_v15 = vor.u32 1.1754944e-38, %v325_v56 }
 0x1cd   :  { %v723_v22 = vpop.eup %722 }
 0x1ce   :  { %v301_v42 = vmul.f32 %v723_v22, %v1106_v0  ;;  %v1136_v16 = vpop.xlane.xlu0 %491  ;;  %v1138_v25 = vpop.xlane.xlu1 %485  ;;  %v294_v30 = vsel %vm1140_vm6, %v721_v60, %v290_v20  ;;  %vm306_vm9 = vweird.f32 %v723_v22 }
 0x1cf   :  { %v1144_v44 = vpop.eup %724  ;;  %726 = vrcp.f32 %v1136_v16  ;;  %v532_v28 = vpop.f32.mrf.mxu3  ;;  %v299_v8 = vsel %vm296_vm8, %v298_v49, %v294_v30  ;;  %vm1170_vm11 = vmor %vm305_vm10, %vm306_vm9  ;;  %v611_v59 = vand.u32 2147483648, %v1138_v25  ;;  %v609_v31 = vand.u32 2147483647, %v1138_v25 }
 0x1d0   :  { %v302_v32 = vsub.f32 1.0, %v301_v42  ;;  %v315_v33 = vmul.f32 %v1144_v44, %v1109_v9  ;;  %728 = vrcp.f32 %v1138_v25  ;;  %v1152_v4 = vpop.xlane.xlu2 %488  ;;  %v645_v36 = vmul.f32 %v599_v34, %v532_v28 }
 0x1d1   :  { %730 = vrcp.f32 %v1152_v4  ;;  %v221_v37 = vpop.f32.mrf.mxu1  ;;  %vm320_vm13 = vweird.f32 %v1144_v44  ;;  %v625_v0 = vand.u32 2147483648, %v1152_v4  ;;  %v623_v2 = vand.u32 2147483647, %v1152_v4 }
 0x1d2   :  { %v316_v38 = vsub.f32 1.0, %v315_v33  ;;  %652 = vst.msk [vmem:[%s1235_s4 + $0x50] sm:$0xff] %vm61_vm0, %v645_v36  ;;  %v332_v40 = vmul.f32 %v299_v8, %v221_v37  ;;  %v303_v10 = vmul.f32 %v723_v22, %v302_v32  ;;  %vm605_vm2 = vweird.f32 %v1138_v25  ;;  %vm1194_vm3 = vmor %vm319_vm1, %vm320_vm13 }
 0x1d3   :  { %vm619_vm5 = vweird.f32 %v1152_v4  ;;  %v612_v11 = vor.u32 1.1754944e-38, %v611_v59  ;;  %vm610_vm7 = vcmp.eq.f32.partialorder %v609_v31, 8.507059e+37  ;;  %v626_v35 = vor.u32 1.1754944e-38, %v625_v0 }
 0x1d4   :  { %339 = vst.msk [vmem:[%s1235_s4 + $0x20] sm:$0xff] %vm61_vm0, %v332_v40  ;;  %v304_v46 = vadd.f32 %v723_v22, %v303_v10  ;;  %v317_v50 = vmul.f32 %v1144_v44, %v316_v38  ;;  %vm624_vm9 = vcmp.eq.f32.partialorder %v623_v2, 8.507059e+37  ;;  %v639_v26 = vand.u32 2147483648, %v1136_v16 }
 0x1d5   :  { %v1161_v45 = vpop.eup %726  ;;  %v637_v28 = vand.u32 2147483647, %v1136_v16 }
 0x1d6   :  { %v729_v47 = vpop.eup %728  ;;  %v629_v14 = vmul.f32 %v1161_v45, %v1136_v16  ;;  %v308_v53 = vsel %vm1170_vm11, %v723_v22, %v304_v46  ;;  %v318_v63 = vadd.f32 %v1144_v44, %v317_v50  ;;  %vm634_vm10 = vweird.f32 %v1161_v45 }
 0x1d7   :  { %v731_v51 = vpop.eup %730  ;;  %v601_v52 = vmul.f32 %v729_v47, %v1138_v25  ;;  %v313_v61 = vsel %vm310_vm12, %v312_v18, %v308_v53  ;;  %vm606_vm14 = vweird.f32 %v729_v47  ;;  %vm633_vm11 = vweird.f32 %v1136_v16 }
 0x1d8   :  { %v615_v21 = vmul.f32 %v731_v51, %v1152_v4  ;;  %v535_v54 = vpop.f32.mrf.mxu3  ;;  %v630_v24 = vsub.f32 1.0, %v629_v14  ;;  %vm620_vm15 = vweird.f32 %v731_v51  ;;  %vm607_vm6 = vmor %vm605_vm2, %vm606_vm14  ;;  %v322_v9 = vsel %vm1194_vm3, %v1144_v44, %v318_v63 }
 0x1d9   :  { %v602_v58 = vsub.f32 1.0, %v601_v52  ;;  %v223_v60 = vpop.f32.mrf.mxu1  ;;  %vm621_vm8 = vmor %vm619_vm5, %vm620_vm15  ;;  %v327_v42 = vsel %vm1198_vm4, %v326_v15, %v322_v9  ;;  %v640_v49 = vor.u32 1.1754944e-38, %v639_v26  ;;  %vm638_vm13 = vcmp.eq.f32.partialorder %v637_v28, 8.507059e+37 }
 0x1da   :  { %v616_v57 = vsub.f32 1.0, %v615_v21  ;;  %v333_v62 = vmul.f32 %v313_v61, %v223_v60  ;;  %v631_v3 = vmul.f32 %v1161_v45, %v630_v24  ;;  %vm635_vm12 = vmor %vm633_vm11, %vm634_vm10 }
 0x1db   :  { %v603_v29 = vmul.f32 %v729_v47, %v602_v58 }
 0x1dc   :  { %v617_v1 = vmul.f32 %v731_v51, %v616_v57  ;;  %340 = vst.msk [vmem:[%s1235_s4 + $0x28] sm:$0xff] %vm61_vm0, %v333_v62  ;;  %v632_v25 = vadd.f32 %v1161_v45, %v631_v3 }
 0x1dd   :  { %v604_v5 = vadd.f32 %v729_v47, %v603_v29 }
 0x1de   :  { %v618_v12 = vadd.f32 %v731_v51, %v617_v1  ;;  %v636_v30 = vsel %vm635_vm12, %v1161_v45, %v632_v25 }
 0x1df   :  { %v608_v13 = vsel %vm607_vm6, %v729_v47, %v604_v5  ;;  %v641_v33 = vsel %vm638_vm13, %v640_v49, %v636_v30 }
 0x1e0   :  { %v613_v17 = vsel %vm610_vm7, %v612_v11, %v608_v13  ;;  %v537_v19 = vpop.f32.mrf.mxu3  ;;  %v622_v20 = vsel %vm621_vm8, %v731_v51, %v618_v12 }
 0x1e1   :  { %v646_v22 = vmul.f32 %v613_v17, %v535_v54  ;;  %v627_v39 = vsel %vm624_vm9, %v626_v35, %v622_v20  ;;  %v226_v23 = vpop.f32.mrf.mxu1 }
 0x1e2   :  { %v647_v27 = vmul.f32 %v627_v39, %v537_v19  ;;  %v334_v44 = vmul.f32 %v327_v42, %v226_v23 }
 0x1e3   :  { %653 = vst.msk [vmem:[%s1235_s4 + $0x58] sm:$0xff] %vm61_vm0, %v646_v22 }
 0x1e4   :  { %654 = vst.msk [vmem:[%s1235_s4 + $0x60] sm:$0xff] %vm61_vm0, %v647_v27 }
 0x1e5   :  { %341 = vst.msk [vmem:[%s1235_s4 + $0x30] sm:$0xff] %vm61_vm0, %v334_v44 }
 0x1e8   :  { %v540_v32 = vpop.f32.mrf.mxu3 }
 0x1e9   :  { %v648_v34 = vmul.f32 %v641_v33, %v540_v32  ;;  %v228_v4 = vpop.f32.mrf.mxu1 }
 0x1eb   :  { %655 = vst.msk [vmem:[%s1235_s4 + $0x68] sm:$0xff] %vm61_vm0, %v648_v34 }
 0x1f0   :  { %v542_v16 = vpop.f32.mrf.mxu3 }

</bundles_post_ra>
